<compile_context>
chip_gen: v7x
topology: tpu7x:2x2x1
jax: 0.10.0
libtpu: 0.0.40
codegen_flags: <defaults>
</compile_context>

<pallas_src>
import math

import jax
import jax.numpy as jnp
from jax.experimental import pallas as pl
from jax.experimental.pallas import tpu as pltpu


def _copy_kernel(x_ref, o_ref):
    # Lane-dense 2-D tile copy: identical (tile_rows, lane) shapes on both
    # refs -> unmasked vld/vst, no relayout.
    o_ref[...] = x_ref[...]


def _resolve_shape(total: int, shape) -> tuple:
    """Resolve torch-style view shape (at most one -1) with pure Python ints."""
    shape = list(shape)
    neg = [i for i, s in enumerate(shape) if s == -1]
    if len(neg) > 1:
        raise ValueError("only one dimension can be inferred (-1)")
    if neg:
        known = math.prod(s for s in shape if s != -1)
        if known == 0 or total % known != 0:
            raise ValueError(
                f"shape {tuple(shape)} is invalid for input of size {total}")
        shape[neg[0]] = total // known
    if math.prod(shape) != total:
        raise ValueError(
            f"shape {tuple(shape)} is invalid for input of size {total}")
    return tuple(shape)


def _choose_tiling(total: int, dtype):
    """Pick a lane-dense (rows, lane) factorization and an even tile_rows.

    Returns None if the element count has no multiple-of-128 factor.
    """
    itemsize = jnp.dtype(dtype).itemsize
    lane = None
    for cand in (2048, 1024, 512, 256, 128):  # prefer wide, lane-dense tiles
        if total % cand == 0:
            lane = cand
            break
    if lane is None:
        return None
    rows = total // lane

    # dtype-aware sublane multiple: 8 (f32), 16 (bf16), 32 (int8/fp8)
    sub = max(8, 32 // itemsize)

    # ~4 MiB per tile (perf review): with in+out double buffering that is
    # ~16 MiB of VMEM; we raise vmem_limit_bytes explicitly so this is safe
    # on all generations and amortizes the ~0.35 us per-grid-step overhead.
    target_bytes = 4 * 1024 * 1024
    target_rows = max(sub, ((target_bytes // (lane * itemsize)) // sub) * sub)

    if rows <= target_rows or rows <= sub:
        # Single full-extent block: exempt from the (8,128) divisibility rule,
        # and avoids pipeline overhead for small inputs.
        return rows, lane, rows

    # Prefer a tile_rows that EVENLY divides rows (and is a multiple of `sub`)
    # near the byte target, so every grid step is a full, unmasked tile.
    best = None
    for d in range(1, int(math.isqrt(rows)) + 1):
        if rows % d == 0:
            for cand in (d, rows // d):
                if cand % sub == 0 and cand <= 2 * target_rows:
                    if best is None or abs(cand - target_rows) < abs(best - target_rows):
                        best = cand
    tile_rows = best if best is not None else target_rows  # fallback: partial tail tile
    return rows, lane, tile_rows


def _materialized_copy_2d(flat2d: jax.Array, tile_rows: int, *, donate: bool) -> jax.Array:
    rows, lane = flat2d.shape
    return pl.pallas_call(
        _copy_kernel,
        out_shape=jax.ShapeDtypeStruct((rows, lane), flat2d.dtype),
        grid=(pl.cdiv(rows, tile_rows),),
        in_specs=[pl.BlockSpec((tile_rows, lane), lambda i: (i, 0))],
        out_specs=pl.BlockSpec((tile_rows, lane), lambda i: (i, 0)),
        input_output_aliases=({0: 0} if donate else {}),
        compiler_params=pltpu.CompilerParams(
            dimension_semantics=("parallel",),
            # 4 buffers * <=4 MiB tiles = <=16 MiB; 48 MiB gives headroom on
            # v5e/v6e (128 MiB phys) and stays under v7x's 64 MiB physical.
            vmem_limit_bytes=48 << 20,
        ),
    )(flat2d)


def pallas_view(x: jax.Array, shape, *, materialize: bool = False,
                donate: bool = False) -> jax.Array:
    """Equivalent of torch.Tensor.view(*shape) on a row-major JAX array.

    materialize=False (default): zero-copy jnp.reshape — matches torch's
    zero-copy view semantics and has a 0-byte data-movement floor.
    materialize=True: tiled Pallas copy kernel producing a physically distinct
    buffer in the new shape.  donate=True aliases input->output so no second
    HBM allocation is made (caller must not reuse the input afterwards).
    """
    total = x.size
    out_shape = _resolve_shape(total, shape)

    if not materialize:
        return jnp.reshape(x, out_shape)

    tiling = _choose_tiling(total, x.dtype)
    if tiling is None:
        # No multiple-of-128 factorization.  Still produce a real materialized
        # copy via a single full-extent block if it fits comfortably in VMEM.
        nbytes = total * jnp.dtype(x.dtype).itemsize
        if nbytes <= 8 * 1024 * 1024:
            flat2d = jnp.reshape(x, (1, total))
            out2d = _materialized_copy_2d(flat2d, 1, donate=donate)
            return jnp.reshape(out2d, out_shape)
        # TODO(synk): large buffers with no 128-factor fall back to a plain
        # reshape (alias) instead of a tiled masked copy.
        return jnp.reshape(x, out_shape)

    rows, lane, tile_rows = tiling

    # Wrapper-side reshapes are metadata-level (row-major); the kernel only
    # ever sees the lane-dense (rows, lane) layout.
    flat2d = jnp.reshape(x, (rows, lane))
    out2d = _materialized_copy_2d(flat2d, tile_rows, donate=donate)
    return jnp.reshape(out2d, out_shape)


if __name__ == "__main__":
    key = jax.random.PRNGKey(0)
    # Small NCHW input consistent with a conv-style pipeline.
    B, C, H, W = 2, 4, 16, 16
    x = jax.random.normal(key, (B, C, H, W), dtype=jnp.float32)

    # Module instance semantics: View(B, -1)  ->  (2, 1024)
    target_shape = (B, -1)

    # Default path: zero-copy view (what production code should prefer).
    y_fast = jax.block_until_ready(pallas_view(x, target_shape))

    # Materialized Pallas-copy path (exercises the copy kernel).
    y = jax.block_until_ready(pallas_view(x, target_shape, materialize=True))

    # Fallback path: element count with no factor of 128 -> single-block copy.
    x_odd = jax.random.normal(key, (2, 3, 5, 7), dtype=jnp.float32)
    y_odd = jax.block_until_ready(pallas_view(x_odd, (2, -1), materialize=True))

    # Correctness: row-major reshape is bit-exact vs torch .view on contiguous.
    y_ref = jnp.reshape(x, (B, C * H * W))
    assert y.shape == (B, C * H * W), y.shape
    assert y.dtype == x.dtype
    assert jnp.array_equal(y, y_ref)
    assert jnp.array_equal(y_fast, y_ref)
    assert jnp.array_equal(y_odd, jnp.reshape(x_odd, (2, 3 * 5 * 7)))

    print("KERNEL_OK")
</pallas_src>

<mosaic_0001>
module attributes {stable_mosaic.version = 11 : i64} {
  func.func @_copy_kernel(%arg0: i32, %arg1: memref<1x2048xf32, #tpu.memory_space<vmem>>, %arg2: memref<1x2048xf32, #tpu.memory_space<vmem>>) attributes {dimension_semantics = [#tpu.dimension_semantics<parallel>], iteration_bounds = array<i64: 1>, scalar_prefetch = 0 : i64, scratch_operands = 0 : i64, tpu.core_type = #tpu.core_type<tc>, window_params = [{transform_indices = @transform_0, window_bounds = array<i64: 1, 2048>}, {transform_indices = @transform_1, window_bounds = array<i64: 1, 2048>}]} {
    %c0 = arith.constant 0 : index
    %c0_0 = arith.constant 0 : index
    %0 = vector.load %arg1[%c0, %c0_0] : memref<1x2048xf32, #tpu.memory_space<vmem>>, vector<1x2048xf32>
    %c0_1 = arith.constant 0 : index
    %c0_2 = arith.constant 0 : index
    %1 = vector.load %arg2[%c0_1, %c0_2] : memref<1x2048xf32, #tpu.memory_space<vmem>>, vector<1x2048xf32>
    tpu.vector_store %arg2[%c0_1, %c0_2], %0 {strides = array<i32>} : memref<1x2048xf32, #tpu.memory_space<vmem>>, vector<1x2048xf32>,
    return
  }
  func.func @transform_0(%arg0: i32) -> (i32, i32) {
    %c0_i32 = arith.constant 0 : i32
    %c0_i32_0 = arith.constant 0 : i32
    return %arg0, %c0_i32 : i32, i32
  }
  func.func @transform_1(%arg0: i32) -> (i32, i32) {
    %c0_i32 = arith.constant 0 : i32
    %c0_i32_0 = arith.constant 0 : i32
    return %arg0, %c0_i32 : i32, i32
  }
}

</mosaic_0001>

<bundles_post_ra>
// kernel: tpu_custom_call.1
= control target key start
LH: loop header
LB: loop body
LE: loop exit
PB: predicated region body
PF: predicated region fallthrough
CT: control target
= control target key end

     0   :  { %6 = vsyncpa [#allocation3], 0  ;;  %s126_s0 = inlined_call_operand.hbm [shape: f32[1,2048], index: 0, kind: input, shape index: {}]   ;;  %s127_s1 = inlined_call_operand.hbm [shape: f32[1,2048], index: 1, kind: output, shape index: {}]  }
   0x1   :  { %7 = vsyncpa [#allocation4], 0  ;;  %s90_s6 = smov [#allocation2]   ;;  %s42_s10 = scalar_lea.hbm %s126_s0, 256 }
   0x2   :  { %s14_s7 = sshll.u32 %s90_s6, 4  ;;  %p43_p0 = scmp.ne.s32.totalorder %s126_s0, %s42_s10  ;;  %s15_s7 = int_to_ptr.vmem [resolvable:$true] %s14_s7 }
   0x3   :  { %p46_p1 = scmp.lt.u32.totalorder %s42_s10, %s126_s0 }
   0x5   :  { %p48_p2 = pnand %p46_p1, %p43_p0 }
   0x7   :  { %51 = shalt.err (!%p48_p2)
}
   0x8   :  { %s52_s15 = scalar_lea.vmem %s15_s7, 256  ;;  %p57_p4 = scmp.lt.s32.totalorder %s15_s7, %s15_s7 }
   0x9   :  { %p53_p3 = scmp.ne.s32.totalorder %s15_s7, %s52_s15  ;;  %p58_p5 = scmp.lt.s32.totalorder %s52_s15, %s52_s15 }
   0xb   :  { %p59_p6 = por %p58_p5, %p57_p4 }
   0xd   :  { %p60_p7 = pnand %p59_p6, %p53_p3 }
   0xf   :  { %63 = shalt.err (!%p60_p7)
}
  0x10   :  { %17 = dma.hbm_to_vmem [thread:$0]  %s126_s0, 256, %s15_s7, [#allocation3]  }
  0x11   :  { %86 = dma.done.wait [#allocation3], 256  }
  0x12   :  { %87 = vsyncadd [#allocation3], 4294967040  ;;  %s91_s18 = smov [#allocation5]   ;;  %v21_v0 = vld [vmem:[#allocation2] sm:$0xff]  ;;  %v22_v1 = vld [vmem:[#allocation2 + $0x8] sm:$0xff] }
  0x13   :  { %s31_s19 = sshll.u32 %s91_s18, 4  ;;  %23 = vst [vmem:[#allocation5] sm:$0xff] %v21_v0  ;;  %24 = vst [vmem:[#allocation5 + $0x8] sm:$0xff] %v22_v1  ;;  %s32_s19 = int_to_ptr.vmem [resolvable:$true] %s31_s19 }
  0x14   :  { %s64_s20 = scalar_lea.vmem %s32_s19, 256  ;;  %p69_p9 = scmp.lt.s32.totalorder %s32_s19, %s32_s19 }
  0x15   :  { %p65_p8 = scmp.ne.s32.totalorder %s32_s19, %s64_s20  ;;  %p70_p10 = scmp.lt.s32.totalorder %s64_s20, %s64_s20 }
  0x17   :  { %p71_p11 = por %p70_p10, %p69_p9 }
  0x19   :  { %p72_p12 = pnand %p71_p11, %p65_p8 }
  0x1b   :  { %75 = shalt.err (!%p72_p12)
}
  0x1c   :  { %s76_s0 = scalar_lea.hbm %s127_s1, 256 }
  0x1d   :  { %p77_p13 = scmp.ne.s32.totalorder %s127_s1, %s76_s0  ;;  %p80_p0 = scmp.lt.u32.totalorder %s76_s0, %s127_s1 }
  0x1f   :  { %p82_p1 = pnand %p80_p0, %p77_p13 }
  0x21   :  { %85 = shalt.err (!%p82_p1)
}
  0x22   :  { %34 = dma.vmem_to_hbm [thread:$0]  %s32_s19, 256, %s127_s1, [#allocation4]  }
  0x23   :  { %88 = dma.done.wait [#allocation4], 256  }
  0x24   :  { %89 = vsyncadd [#allocation4], 4294967040 }
  0x25   :  { %38 = vsyncpa [#allocation3], 1 }
  0x26   :  { %39 = vsyncpa [#allocation4], 1 }

</bundles_post_ra>
